<compile_context>
chip_gen: v5e
topology: v5e:2x2
jax: 0.10.0
libtpu: 0.0.40
codegen_flags: <defaults>
</compile_context>

<pallas_src>
import functools

import jax
import jax.numpy as jnp
from jax import lax
from jax.experimental import pallas as pl
from jax.experimental.pallas import tpu as pltpu

LANES = 128
CHUNK_ROWS = 512            # inner reduction chunk (bounds the f32 loss temp)
FALLBACK_TILE_ROWS = 2048   # previously proven-safe configuration
FALLBACK_BUFFERS = 2


def _round_up(x, m):
    return ((x + m - 1) // m) * m


def _bce_partial_kernel(x_ref, t_ref, out_ref, *, tile_rows, chunk_rows,
                        valid_rows_last, single_log):
    """Per grid block: writes an (8, LANES) float32 partial sum of the BCE loss."""
    i = pl.program_id(0)
    nblk = pl.num_programs(0)
    n_chunks = tile_rows // chunk_rows

    def chunk_loss(c):
        start = pl.multiple_of(c * chunk_rows, chunk_rows)
        x = x_ref[pl.ds(start, chunk_rows), :].astype(jnp.float32)
        t = t_ref[pl.ds(start, chunk_rows), :].astype(jnp.float32)
        if single_log:
            # Binary-target fast path: one EUP log per element.
            p = jnp.where(t >= 0.5, x, 1.0 - x)
            return -jnp.maximum(jnp.log(p), -100.0)
        # General (soft-target) path. log1p(-x) matches PyTorch numerics near
        # x ~ 1; rewritten form saves one VPU mul + sub (no f32 FMA on VPU).
        log_x = jnp.maximum(jnp.log(x), -100.0)
        log_1mx = jnp.maximum(jnp.log1p(-x), -100.0)
        return -(log_1mx + t * (log_x - log_1mx))

    def reduce_chunk(v):
        # (chunk_rows, 128) -> (chunk_rows//8, 8, 128) -> VPU adds to (8, 128).
        return v.reshape(chunk_rows // 8, 8, LANES).sum(axis=0)

    zero = jnp.zeros((8, LANES), jnp.float32)

    def body_plain(c, acc):
        return acc + reduce_chunk(chunk_loss(c))

    def body_masked(c, acc):
        loss = chunk_loss(c)
        # Row mask for the ragged last block (block-local rows vs a static
        # Python int). Select -- not multiply -- so NaN/Inf computed from
        # out-of-bounds garbage rows is dropped.
        row = jax.lax.broadcasted_iota(jnp.int32, loss.shape, 0) + c * chunk_rows
        return acc + reduce_chunk(jnp.where(row < valid_rows_last, loss, 0.0))

    if valid_rows_last == tile_rows:
        # Statically known: every block (incl. the last) fully valid -> no mask.
        out_ref[...] = lax.fori_loop(0, n_chunks, body_plain, zero, unroll=True)
    else:
        @pl.when(i < nblk - 1)
        def _():
            out_ref[...] = lax.fori_loop(0, n_chunks, body_plain, zero,
                                         unroll=True)

        @pl.when(i == nblk - 1)
        def _():
            out_ref[...] = lax.fori_loop(0, n_chunks, body_masked, zero,
                                         unroll=True)


def _select_tiling():
    """Per-generation tile_rows_max, input buffer count, explicit-VMEM flag."""
    kind = ""
    try:
        kind = jax.devices()[0].device_kind.lower()
    except Exception:
        pass
    if ("v6" in kind) or ("v7" in kind):
        # 8192x128xf32 = 4 MiB/input/buffer; 2 inputs x 3 buffers = 24 MiB,
        # kept under an explicit 48 MiB scoped-VMEM limit (v7x physical 64 MiB).
        return 8192, 3, True
    # v5e / unknown: 4096 rows x 2 buffers x 2 inputs = 8 MiB, fits the 16 MiB
    # default scoped VMEM; bigger tiles buy little under its slower HBM.
    return 4096, 2, False


def _bce_partials(x2d, t2d, rows, *, tile_rows_max, buffer_count, single_log,
                  set_vmem_limit):
    """Launch the streaming kernel over the (rows, 128) prefix; returns partials."""
    if rows >= CHUNK_ROWS:
        tile_rows = min(tile_rows_max, _round_up(rows, CHUNK_ROWS))
        chunk_rows = CHUNK_ROWS
    else:
        tile_rows = _round_up(rows, 8)
        chunk_rows = tile_rows
    num_blocks = pl.cdiv(rows, tile_rows)
    valid_rows_last = rows - (num_blocks - 1) * tile_rows  # static Python int

    kernel = functools.partial(
        _bce_partial_kernel, tile_rows=tile_rows, chunk_rows=chunk_rows,
        valid_rows_last=valid_rows_last, single_log=single_log)

    def in_spec():
        if buffer_count != 2:
            return pl.BlockSpec((tile_rows, LANES), lambda i: (i, 0),
                                pipeline_mode=pl.Buffered(buffer_count))
        return pl.BlockSpec((tile_rows, LANES), lambda i: (i, 0))

    n_elems = rows * LANES
    cost = pl.CostEstimate(
        flops=10 * n_elems,
        transcendentals=(1 if single_log else 2) * n_elems,
        bytes_accessed=n_elems * (x2d.dtype.itemsize + t2d.dtype.itemsize)
        + num_blocks * 8 * LANES * 4,
    )

    compiler_params = pltpu.CompilerParams(
        dimension_semantics=("parallel",),
        vmem_limit_bytes=(48 * 1024 * 1024) if set_vmem_limit else None,
    )

    return pl.pallas_call(
        kernel,
        out_shape=jax.ShapeDtypeStruct((num_blocks * 8, LANES), jnp.float32),
        grid_spec=pltpu.PrefetchScalarGridSpec(
            num_scalar_prefetch=0,
            grid=(num_blocks,),
            in_specs=[in_spec(), in_spec()],
            out_specs=pl.BlockSpec((8, LANES), lambda i: (i, 0)),
        ),
        compiler_params=compiler_params,
        cost_estimate=cost,
    )(x2d, t2d)


def custom_bce_loss(inp, target, weight_fn=None, *, binary_targets=False):
    """Pallas implementation of CustomBCELoss.forward.

    inp, target: same shape (any rank, e.g. NCHW), values of `inp` in (0, 1).
    binary_targets=True enables the single-log fast path (hard 0/1 labels only).
    Returns a scalar float32 loss.
    """
    assert inp.shape == target.shape
    n = inp.size
    x_flat = inp.reshape(-1)
    t_flat = target.reshape(-1)

    rows = n // LANES
    tail = n - rows * LANES

    total = jnp.float32(0.0)
    if rows > 0:
        # 128-aligned prefix -> streaming Pallas kernel. Only slice when there
        # is actually a ragged tail (keeps the aligned case copy-free).
        if tail:
            x_pref = x_flat[: rows * LANES]
            t_pref = t_flat[: rows * LANES]
        else:
            x_pref, t_pref = x_flat, t_flat
        x2d = x_pref.reshape(rows, LANES)
        t2d = t_pref.reshape(rows, LANES)

        tile_rows_max, buffer_count, set_vmem = _select_tiling()
        try:
            partials = _bce_partials(
                x2d, t2d, rows, tile_rows_max=tile_rows_max,
                buffer_count=buffer_count, single_log=binary_targets,
                set_vmem_limit=set_vmem)
        except Exception:
            # Conservative fallback: previously proven tile / default buffering.
            partials = _bce_partials(
                x2d, t2d, rows, tile_rows_max=FALLBACK_TILE_ROWS,
                buffer_count=FALLBACK_BUFFERS, single_log=binary_targets,
                set_vmem_limit=False)
        total = total + jnp.sum(partials)

    if tail:
        # <=127 trailing elements: plain jnp; avoids padding/copying the full
        # flattened tensors (which would double HBM traffic when ragged).
        xt = x_flat[rows * LANES:].astype(jnp.float32)
        tt = t_flat[rows * LANES:].astype(jnp.float32)
        log_x = jnp.maximum(jnp.log(xt), -100.0)
        log_1mx = jnp.maximum(jnp.log1p(-xt), -100.0)
        total = total + jnp.sum(-(log_1mx + tt * (log_x - log_1mx)))

    # Mean over all n elements; reciprocal computed at double precision on the
    # host so only one f32 rounding is incurred (matters for n > 2^24).
    mean_loss = total * (1.0 / float(n))

    # weight_fn(target) defaults to the constant 1 (as in the PyTorch module).
    if weight_fn is None:
        weight = jnp.float32(1.0)
    else:
        weight = jnp.asarray(weight_fn(target), jnp.float32)
    weighted = weight * mean_loss
    # .mean() on a scalar (or broadcast of scalar*scalar) is the identity / mean.
    return jnp.mean(weighted)


def _reference(inp, target):
    x = inp.astype(jnp.float32).reshape(-1)
    t = target.astype(jnp.float32).reshape(-1)
    log_x = jnp.maximum(jnp.log(x), -100.0)
    log_1mx = jnp.maximum(jnp.log1p(-x), -100.0)
    return jnp.mean(-(t * log_x + (1.0 - t) * log_1mx))


if __name__ == "__main__":
    key = jax.random.PRNGKey(0)
    k1, k2 = jax.random.split(key)

    # NCHW inputs, as the PyTorch module would typically see (post-sigmoid probs).
    shape = (2, 4, 16, 16)
    inp = jax.random.uniform(k1, shape, jnp.float32, minval=1e-4, maxval=1.0 - 1e-4)
    target = (jax.random.uniform(k2, shape, jnp.float32) > 0.5).astype(jnp.float32)

    out = jax.block_until_ready(custom_bce_loss(inp, target))
    ref = _reference(inp, target)
    assert jnp.allclose(out, ref, rtol=1e-5, atol=1e-6), (out, ref)

    # Binary-target single-log fast path gives the same answer for hard labels.
    out_fast = jax.block_until_ready(custom_bce_loss(inp, target, binary_targets=True))
    assert jnp.allclose(out_fast, ref, rtol=1e-5, atol=1e-6), (out_fast, ref)

    # Ragged size (not a multiple of 128): masked last block + jnp tail path.
    shape2 = (3, 5, 7, 11)  # 1155 elements
    inp2 = jax.random.uniform(k1, shape2, jnp.float32, minval=1e-4, maxval=1.0 - 1e-4)
    tgt2 = (jax.random.uniform(k2, shape2, jnp.float32) > 0.5).astype(jnp.float32)
    out2 = jax.block_until_ready(custom_bce_loss(inp2, tgt2))
    ref2 = _reference(inp2, tgt2)
    assert jnp.allclose(out2, ref2, rtol=1e-5, atol=1e-6), (out2, ref2)

    print("KERNEL_OK")
</pallas_src>

<mosaic_0001>
module attributes {stable_mosaic.version = 11 : i64} {
  func.func @_bce_partial_kernel(%arg0: i32, %arg1: memref<16x128xf32, #tpu.memory_space<vmem>>, %arg2: memref<16x128xf32, #tpu.memory_space<vmem>>, %arg3: memref<8x128xf32, #tpu.memory_space<vmem>>) attributes {dimension_semantics = [#tpu.dimension_semantics<parallel>], iteration_bounds = array<i64: 1>, scalar_prefetch = 0 : i64, scratch_operands = 0 : i64, tpu.core_type = #tpu.core_type<tc>, window_params = [{transform_indices = @transform_0, window_bounds = array<i64: 16, 128>}, {transform_indices = @transform_1, window_bounds = array<i64: 16, 128>}, {transform_indices = @transform_2, window_bounds = array<i64: 8, 128>}]} {
    %cst = arith.constant 0.000000e+00 : f32
    %0 = vector.broadcast %cst : f32 to vector<8x128xf32>
    %c0_i32 = arith.constant 0 : i32
    %c16_i32 = arith.constant 16 : i32
    %1 = arith.muli %c0_i32, %c16_i32 : i32
    %2 = tpu.assume_multiple %1, 16 : i32
    %3 = arith.index_cast %2 : i32 to index
    %c0 = arith.constant 0 : index
    %4 = vector.load %arg1[%3, %c0] : memref<16x128xf32, #tpu.memory_space<vmem>>, vector<16x128xf32>
    %5 = arith.index_cast %2 : i32 to index
    %c0_0 = arith.constant 0 : index
    %6 = vector.load %arg2[%5, %c0_0] : memref<16x128xf32, #tpu.memory_space<vmem>>, vector<16x128xf32>
    %7 = math.log %4 : vector<16x128xf32>
    %cst_1 = arith.constant -1.000000e+02 : f32
    %8 = vector.broadcast %cst_1 : f32 to vector<16x128xf32>
    %9 = arith.maximumf %7, %8 : vector<16x128xf32>
    %cst_2 = arith.constant 0.000000e+00 : f32
    %10 = vector.broadcast %cst_2 : f32 to vector<16x128xf32>
    %11 = arith.subf %10, %4 : vector<16x128xf32>
    %12 = math.log1p %11 : vector<16x128xf32>
    %cst_3 = arith.constant -1.000000e+02 : f32
    %13 = vector.broadcast %cst_3 : f32 to vector<16x128xf32>
    %14 = arith.maximumf %12, %13 : vector<16x128xf32>
    %15 = arith.subf %9, %14 : vector<16x128xf32>
    %16 = arith.mulf %6, %15 : vector<16x128xf32>
    %17 = arith.addf %14, %16 : vector<16x128xf32>
    %cst_4 = arith.constant 0.000000e+00 : f32
    %18 = vector.broadcast %cst_4 : f32 to vector<16x128xf32>
    %19 = arith.subf %18, %17 : vector<16x128xf32>
    %20 = vector.shape_cast %19 : vector<16x128xf32> to vector<2x8x128xf32>
    %cst_5 = arith.constant dense<0.000000e+00> : vector<8x128xf32>
    %21 = vector.multi_reduction <add>, %20, %cst_5 [0] : vector<2x8x128xf32> to vector<8x128xf32>
    %22 = arith.addf %0, %21 : vector<8x128xf32>
    %c1_i32 = arith.constant 1 : i32
    %c0_6 = arith.constant 0 : index
    %c0_7 = arith.constant 0 : index
    %23 = vector.load %arg3[%c0_6, %c0_7] : memref<8x128xf32, #tpu.memory_space<vmem>>, vector<8x128xf32>
    tpu.vector_store %arg3[%c0_6, %c0_7], %22 {strides = array<i32>} : memref<8x128xf32, #tpu.memory_space<vmem>>, vector<8x128xf32>,
    return
  }
  func.func @transform_0(%arg0: i32) -> (i32, i32) {
    %c0_i32 = arith.constant 0 : i32
    %c0_i32_0 = arith.constant 0 : i32
    return %arg0, %c0_i32 : i32, i32
  }
  func.func @transform_1(%arg0: i32) -> (i32, i32) {
    %c0_i32 = arith.constant 0 : i32
    %c0_i32_0 = arith.constant 0 : i32
    return %arg0, %c0_i32 : i32, i32
  }
  func.func @transform_2(%arg0: i32) -> (i32, i32) {
    %c0_i32 = arith.constant 0 : i32
    %c0_i32_0 = arith.constant 0 : i32
    return %arg0, %c0_i32 : i32, i32
  }
}

module attributes {stable_mosaic.version = 11 : i64} {
  func.func @_bce_partial_kernel(%arg0: i32, %arg1: memref<16x128xf32, #tpu.memory_space<vmem>>, %arg2: memref<16x128xf32, #tpu.memory_space<vmem>>, %arg3: memref<8x128xf32, #tpu.memory_space<vmem>>) attributes {dimension_semantics = [#tpu.dimension_semantics<parallel>], iteration_bounds = array<i64: 1>, scalar_prefetch = 0 : i64, scratch_operands = 0 : i64, tpu.core_type = #tpu.core_type<tc>, window_params = [{transform_indices = @transform_0, window_bounds = array<i64: 16, 128>}, {transform_indices = @transform_1, window_bounds = array<i64: 16, 128>}, {transform_indices = @transform_2, window_bounds = array<i64: 8, 128>}]} {
    %cst = arith.constant 0.000000e+00 : f32
    %0 = vector.broadcast %cst : f32 to vector<8x128xf32>
    %c0_i32 = arith.constant 0 : i32
    %c16_i32 = arith.constant 16 : i32
    %1 = arith.muli %c0_i32, %c16_i32 : i32
    %2 = tpu.assume_multiple %1, 16 : i32
    %3 = arith.index_cast %2 : i32 to index
    %c0 = arith.constant 0 : index
    %4 = vector.load %arg1[%3, %c0] : memref<16x128xf32, #tpu.memory_space<vmem>>, vector<16x128xf32>
    %5 = arith.index_cast %2 : i32 to index
    %c0_0 = arith.constant 0 : index
    %6 = vector.load %arg2[%5, %c0_0] : memref<16x128xf32, #tpu.memory_space<vmem>>, vector<16x128xf32>
    %7 = math.log %4 : vector<16x128xf32>
    %cst_1 = arith.constant -1.000000e+02 : f32
    %8 = vector.broadcast %cst_1 : f32 to vector<16x128xf32>
    %9 = arith.maximumf %7, %8 : vector<16x128xf32>
    %cst_2 = arith.constant 0.000000e+00 : f32
    %10 = vector.broadcast %cst_2 : f32 to vector<16x128xf32>
    %11 = arith.subf %10, %4 : vector<16x128xf32>
    %12 = math.log1p %11 : vector<16x128xf32>
    %cst_3 = arith.constant -1.000000e+02 : f32
    %13 = vector.broadcast %cst_3 : f32 to vector<16x128xf32>
    %14 = arith.maximumf %12, %13 : vector<16x128xf32>
    %15 = arith.subf %9, %14 : vector<16x128xf32>
    %16 = arith.mulf %6, %15 : vector<16x128xf32>
    %17 = arith.addf %14, %16 : vector<16x128xf32>
    %cst_4 = arith.constant 0.000000e+00 : f32
    %18 = vector.broadcast %cst_4 : f32 to vector<16x128xf32>
    %19 = arith.subf %18, %17 : vector<16x128xf32>
    %20 = vector.shape_cast %19 : vector<16x128xf32> to vector<2x8x128xf32>
    %cst_5 = arith.constant dense<0.000000e+00> : vector<8x128xf32>
    %21 = vector.multi_reduction <add>, %20, %cst_5 [0] : vector<2x8x128xf32> to vector<8x128xf32>
    %22 = arith.addf %0, %21 : vector<8x128xf32>
    %c1_i32 = arith.constant 1 : i32
    %c0_6 = arith.constant 0 : index
    %c0_7 = arith.constant 0 : index
    %23 = vector.load %arg3[%c0_6, %c0_7] : memref<8x128xf32, #tpu.memory_space<vmem>>, vector<8x128xf32>
    tpu.vector_store %arg3[%c0_6, %c0_7], %22 {strides = array<i32>} : memref<8x128xf32, #tpu.memory_space<vmem>>, vector<8x128xf32>,
    return
  }
  func.func @transform_0(%arg0: i32) -> (i32, i32) {
    %c0_i32 = arith.constant 0 : i32
    %c0_i32_0 = arith.constant 0 : i32
    return %arg0, %c0_i32 : i32, i32
  }
  func.func @transform_1(%arg0: i32) -> (i32, i32) {
    %c0_i32 = arith.constant 0 : i32
    %c0_i32_0 = arith.constant 0 : i32
    return %arg0, %c0_i32 : i32, i32
  }
  func.func @transform_2(%arg0: i32) -> (i32, i32) {
    %c0_i32 = arith.constant 0 : i32
    %c0_i32_0 = arith.constant 0 : i32
    return %arg0, %c0_i32 : i32, i32
  }
}

</mosaic_0001>

<bundles_post_ra>
// kernel: tpu_custom_call.1
= control target key start
LH: loop header
LB: loop body
LE: loop exit
PB: predicated region body
PF: predicated region fallthrough
CT: control target
= control target key end

     0   :  { %7 = vsyncpa [#allocation3], 0  ;;  %s225_s0 = inlined_call_operand.hbm [shape: f32[16,128], index: 0, kind: input, shape index: {}]   ;;  %s226_s1 = inlined_call_operand.hbm [shape: f32[16,128], index: 1, kind: input, shape index: {}]   ;;  %s227_s2 = inlined_call_operand.hbm [shape: f32[8,128], index: 2, kind: output, shape index: {}]  }
   0x1   :  { %8 = vsyncpa [#allocation6], 0 }
   0x2   :  { %9 = vsyncpa [#allocation4], 0  ;;  %s14_s11 = sshll.u32 %s225_s0, 4  ;;  %s196_s12 = smov [#allocation2]   ;;  %s15_s11 = int_to_ptr.hbm [resolvable:$true] %s14_s11 }
   0x3   :  { %s16_s13 = sshll.u32 %s196_s12, 4  ;;  %s27_s16 = sshll.u32 %s226_s1, 4  ;;  %s17_s13 = int_to_ptr.vmem [resolvable:$true] %s16_s13  ;;  %s28_s16 = int_to_ptr.hbm [resolvable:$true] %s27_s16 }
   0x4   :  { %s197_s17 = smov 128   ;;  %s198_s18 = smov 8  }
   0x5   :  { %22 = dma.hbm_to_vmem [thread:$0]  %s15_s11, 256, %s17_s13, [#allocation3], %s197_s17, %s197_s17, %s198_s18  }
   0x6   :  { %s199_s19 = smov [#allocation5]  }
   0x7   :  { %s29_s20 = sshll.u32 %s199_s19, 4  ;;  %s30_s20 = int_to_ptr.vmem [resolvable:$true] %s29_s20 }
   0x8   :  { %35 = dma.hbm_to_vmem [thread:$0]  %s28_s16, 256, %s30_s20, [#allocation6], %s197_s17, %s197_s17, %s198_s18  }
   0x9   :  { %190 = dma.done.wait [#allocation3], 256  }
   0xa   :  { %191 = vsyncadd [#allocation3], 4294967040 }
   0xb   :  { %192 = dma.done.wait [#allocation6], 256  }
   0xc   :  { %193 = vsyncadd [#allocation6], 4294967040  ;;  %v44_v0 = vld [vmem:[#allocation2] sm:$0xff]  ;;  %v45_v1 = vld [vmem:[#allocation2 + $0x8] sm:$0xff]  ;;  %s200_s0 = smov [#allocation7]   ;;  %s94_s23 = sshll.u32 %s227_s2, 4  ;;  %s95_s23 = int_to_ptr.hbm [resolvable:$true] %s94_s23 }
   0xd   :  { %110 = vlog2.f32 %v44_v0  ;;  %v54_v2 = vsub.f32 0.0, %v44_v0  ;;  %v55_v3 = vsub.f32 0.0, %v45_v1  ;;  %v46_v27 = vld [vmem:[#allocation5] sm:$0xff]  ;;  %v47_v29 = vld [vmem:[#allocation5 + $0x8] sm:$0xff]  ;;  %s92_s1 = sshll.u32 %s200_s0, 4  ;;  %s93_s1 = int_to_ptr.vmem [resolvable:$true] %s92_s1 }
   0xe   :  { %112 = vlog2.f32 %v45_v1 }
   0xf   :  { %v56_v4 = vadd.f32 1.0, %v54_v2  ;;  %v59_v5 = vmul.f32 -0.5, %v54_v2  ;;  %v65_v6 = vadd.f32 1.0, %v55_v3  ;;  %v68_v7 = vmul.f32 -0.5, %v55_v3 }
  0x10   :  { %v62_v10 = vand.u32 2147483647, %v54_v2  ;;  %v71_v13 = vand.u32 2147483647, %v55_v3 }
  0x11   :  { %114 = vlog2.f32 %v56_v4  ;;  %v60_v8 = vadd.f32 1.0, %v59_v5  ;;  %v69_v11 = vadd.f32 1.0, %v68_v7 }
  0x12   :  { %116 = vlog2.f32 %v65_v6  ;;  %vm63_vm0 = vcmp.lt.f32.partialorder %v62_v10, 0.0004427343  ;;  %vm72_vm1 = vcmp.lt.f32.partialorder %v71_v13, 0.0004427343 }
  0x13   :  { %v111_v9 = vpop.eup %110  ;;  %v61_v16 = vmul.f32 %v60_v8, %v54_v2  ;;  %v70_v18 = vmul.f32 %v69_v11, %v55_v3 }
  0x14   :  { %v113_v12 = vpop.eup %112  ;;  %v49_v14 = vmul.f32 0.6931472, %v111_v9 }
  0x15   :  { %v51_v15 = vmul.f32 0.6931472, %v113_v12 }
  0x16   :  { %v52_v21 = vmax.f32 %v49_v14, -100.0 }
  0x17   :  { %v115_v17 = vpop.eup %114  ;;  %v53_v23 = vmax.f32 %v51_v15, -100.0 }
  0x18   :  { %v117_v19 = vpop.eup %116  ;;  %v58_v20 = vmul.f32 0.6931472, %v115_v17 }
  0x19   :  { %v67_v22 = vmul.f32 0.6931472, %v117_v19 }
  0x1a   :  { %v64_v24 = vsel %vm63_vm0, %v61_v16, %v58_v20 }
  0x1b   :  { %v73_v25 = vsel %vm72_vm1, %v70_v18, %v67_v22  ;;  %v74_v26 = vmax.f32 %v64_v24, -100.0 }
  0x1c   :  { %v75_v28 = vmax.f32 %v73_v25, -100.0 }
  0x1d   :  { %v76_v30 = vsub.f32 %v52_v21, %v74_v26 }
  0x1e   :  { %v77_v31 = vsub.f32 %v53_v23, %v75_v28 }
  0x1f   :  { %v78_v32 = vmul.f32 %v76_v30, %v46_v27 }
  0x20   :  { %v79_v33 = vmul.f32 %v77_v31, %v47_v29 }
  0x21   :  { %v80_v34 = vadd.f32 %v78_v32, %v74_v26 }
  0x22   :  { %v81_v35 = vadd.f32 %v79_v33, %v75_v28 }
  0x23   :  { %v82_v36 = vsub.f32 0.0, %v80_v34 }
  0x24   :  { %v83_v37 = vsub.f32 0.0, %v81_v35 }
  0x26   :  { %v84_v38 = vadd.f32 %v83_v37, %v82_v36 }
  0x28   :  { %86 = vst [vmem:[#allocation7] sm:$0xff] %v84_v38 }
  0x29   :  { %97 = dma.vmem_to_hbm [thread:$0]  %s93_s1, 128, %s95_s23, [#allocation4]  }
  0x2a   :  { %194 = dma.done.wait [#allocation4], 128  }
  0x2b   :  { %195 = vsyncadd [#allocation4], 4294967168 }
  0x2c   :  { %102 = vsyncpa [#allocation3], 1 }
  0x2d   :  { %103 = vsyncpa [#allocation6], 1 }
  0x2e   :  { %104 = vsyncpa [#allocation4], 1 }

// kernel: tpu_custom_call.1
= control target key start
LH: loop header
LB: loop body
LE: loop exit
PB: predicated region body
PF: predicated region fallthrough
CT: control target
= control target key end

     0   :  { %7 = vsyncpa [#allocation3], 0  ;;  %s225_s0 = inlined_call_operand.hbm [shape: f32[16,128], index: 0, kind: input, shape index: {}]   ;;  %s226_s1 = inlined_call_operand.hbm [shape: f32[16,128], index: 1, kind: input, shape index: {}]   ;;  %s227_s2 = inlined_call_operand.hbm [shape: f32[8,128], index: 2, kind: output, shape index: {}]  }
   0x1   :  { %8 = vsyncpa [#allocation6], 0 }
   0x2   :  { %9 = vsyncpa [#allocation4], 0  ;;  %s14_s11 = sshll.u32 %s225_s0, 4  ;;  %s196_s12 = smov [#allocation2]   ;;  %s15_s11 = int_to_ptr.hbm [resolvable:$true] %s14_s11 }
   0x3   :  { %s16_s13 = sshll.u32 %s196_s12, 4  ;;  %s27_s16 = sshll.u32 %s226_s1, 4  ;;  %s17_s13 = int_to_ptr.vmem [resolvable:$true] %s16_s13  ;;  %s28_s16 = int_to_ptr.hbm [resolvable:$true] %s27_s16 }
   0x4   :  { %s197_s17 = smov 128   ;;  %s198_s18 = smov 8  }
   0x5   :  { %22 = dma.hbm_to_vmem [thread:$0]  %s15_s11, 256, %s17_s13, [#allocation3], %s197_s17, %s197_s17, %s198_s18  }
   0x6   :  { %s199_s19 = smov [#allocation5]  }
   0x7   :  { %s29_s20 = sshll.u32 %s199_s19, 4  ;;  %s30_s20 = int_to_ptr.vmem [resolvable:$true] %s29_s20 }
   0x8   :  { %35 = dma.hbm_to_vmem [thread:$0]  %s28_s16, 256, %s30_s20, [#allocation6], %s197_s17, %s197_s17, %s198_s18  }
   0x9   :  { %190 = dma.done.wait [#allocation3], 256  }
   0xa   :  { %191 = vsyncadd [#allocation3], 4294967040 }
   0xb   :  { %192 = dma.done.wait [#allocation6], 256  }
   0xc   :  { %193 = vsyncadd [#allocation6], 4294967040  ;;  %v44_v0 = vld [vmem:[#allocation2] sm:$0xff]  ;;  %v45_v1 = vld [vmem:[#allocation2 + $0x8] sm:$0xff]  ;;  %s200_s0 = smov [#allocation7]   ;;  %s94_s23 = sshll.u32 %s227_s2, 4  ;;  %s95_s23 = int_to_ptr.hbm [resolvable:$true] %s94_s23 }
   0xd   :  { %110 = vlog2.f32 %v44_v0  ;;  %v54_v2 = vsub.f32 0.0, %v44_v0  ;;  %v55_v3 = vsub.f32 0.0, %v45_v1  ;;  %v46_v27 = vld [vmem:[#allocation5] sm:$0xff]  ;;  %v47_v29 = vld [vmem:[#allocation5 + $0x8] sm:$0xff]  ;;  %s92_s1 = sshll.u32 %s200_s0, 4  ;;  %s93_s1 = int_to_ptr.vmem [resolvable:$true] %s92_s1 }
   0xe   :  { %112 = vlog2.f32 %v45_v1 }
   0xf   :  { %v56_v4 = vadd.f32 1.0, %v54_v2  ;;  %v59_v5 = vmul.f32 -0.5, %v54_v2  ;;  %v65_v6 = vadd.f32 1.0, %v55_v3  ;;  %v68_v7 = vmul.f32 -0.5, %v55_v3 }
  0x10   :  { %v62_v10 = vand.u32 2147483647, %v54_v2  ;;  %v71_v13 = vand.u32 2147483647, %v55_v3 }
  0x11   :  { %114 = vlog2.f32 %v56_v4  ;;  %v60_v8 = vadd.f32 1.0, %v59_v5  ;;  %v69_v11 = vadd.f32 1.0, %v68_v7 }
  0x12   :  { %116 = vlog2.f32 %v65_v6  ;;  %vm63_vm0 = vcmp.lt.f32.partialorder %v62_v10, 0.0004427343  ;;  %vm72_vm1 = vcmp.lt.f32.partialorder %v71_v13, 0.0004427343 }
  0x13   :  { %v111_v9 = vpop.eup %110  ;;  %v61_v16 = vmul.f32 %v60_v8, %v54_v2  ;;  %v70_v18 = vmul.f32 %v69_v11, %v55_v3 }
  0x14   :  { %v113_v12 = vpop.eup %112  ;;  %v49_v14 = vmul.f32 0.6931472, %v111_v9 }
  0x15   :  { %v51_v15 = vmul.f32 0.6931472, %v113_v12 }
  0x16   :  { %v52_v21 = vmax.f32 %v49_v14, -100.0 }
  0x17   :  { %v115_v17 = vpop.eup %114  ;;  %v53_v23 = vmax.f32 %v51_v15, -100.0 }
  0x18   :  { %v117_v19 = vpop.eup %116  ;;  %v58_v20 = vmul.f32 0.6931472, %v115_v17 }
  0x19   :  { %v67_v22 = vmul.f32 0.6931472, %v117_v19 }
  0x1a   :  { %v64_v24 = vsel %vm63_vm0, %v61_v16, %v58_v20 }
  0x1b   :  { %v73_v25 = vsel %vm72_vm1, %v70_v18, %v67_v22  ;;  %v74_v26 = vmax.f32 %v64_v24, -100.0 }
  0x1c   :  { %v75_v28 = vmax.f32 %v73_v25, -100.0 }
  0x1d   :  { %v76_v30 = vsub.f32 %v52_v21, %v74_v26 }
  0x1e   :  { %v77_v31 = vsub.f32 %v53_v23, %v75_v28 }
  0x1f   :  { %v78_v32 = vmul.f32 %v76_v30, %v46_v27 }
  0x20   :  { %v79_v33 = vmul.f32 %v77_v31, %v47_v29 }
  0x21   :  { %v80_v34 = vadd.f32 %v78_v32, %v74_v26 }
  0x22   :  { %v81_v35 = vadd.f32 %v79_v33, %v75_v28 }
  0x23   :  { %v82_v36 = vsub.f32 0.0, %v80_v34 }
  0x24   :  { %v83_v37 = vsub.f32 0.0, %v81_v35 }
  0x26   :  { %v84_v38 = vadd.f32 %v83_v37, %v82_v36 }
  0x28   :  { %86 = vst [vmem:[#allocation7] sm:$0xff] %v84_v38 }
  0x29   :  { %97 = dma.vmem_to_hbm [thread:$0]  %s93_s1, 128, %s95_s23, [#allocation4]  }
  0x2a   :  { %194 = dma.done.wait [#allocation4], 128  }
  0x2b   :  { %195 = vsyncadd [#allocation4], 4294967168 }
  0x2c   :  { %102 = vsyncpa [#allocation3], 1 }
  0x2d   :  { %103 = vsyncpa [#allocation6], 1 }
  0x2e   :  { %104 = vsyncpa [#allocation4], 1 }

</bundles_post_ra>
